<compile_context>
chip_gen: v7x
topology: tpu7x:2x2x1
jax: 0.10.0
libtpu: 0.0.40
codegen_flags: <defaults>
</compile_context>

<pallas_src>
import functools

import numpy as np
import jax
import jax.numpy as jnp
from jax import lax
from jax.experimental import pallas as pl
from jax.experimental.pallas import tpu as pltpu


def _vmem_capacity_bytes() -> int:
    try:
        return int(pltpu.get_tpu_info().vmem_capacity_bytes)
    except Exception:
        return 64 * 1024 * 1024  # conservative default (v7x-sized VMEM)


_VMEM_CAP = _vmem_capacity_bytes()


def _sp_loss_kernel(unary_ref, binary_ref, tags_ref, maskw_ref, loss_ref):
    """Per-batch-block hinge loss.

    unary_ref : [Bt, T, Kp] f32
    binary_ref: [Kp, Kp]    f32 or bf16  (same block every grid step -> resident)
    tags_ref  : [2, Bt, T]  i32  (0 = gold, 1 = predicted)
    maskw_ref : [Bt, T]     f32
    loss_ref  : [Bt, 1]     f32  (per-sequence hinge loss)
    """
    unary = unary_ref[...]
    binary = binary_ref[...]
    tags = tags_ref[...]
    w = maskw_ref[...]

    _, Bt, T = tags.shape
    Kp = unary.shape[-1]

    gold = tags[0]            # [Bt, T]
    pred = tags[1]            # [Bt, T]

    # Lane-index iota kept at broadcastable rank (vreg constant, never
    # materialized at [*, Bt, T, Kp]).
    k3 = lax.broadcasted_iota(jnp.int32, (1, 1, Kp), 2)          # [1,1,Kp]

    # ---- Unary term: signed-difference one-hot, one [Bt,T,Kp] pass ----------
    d = ((k3 == pred[..., None]).astype(jnp.float32)
         - (k3 == gold[..., None]).astype(jnp.float32))          # [Bt,T,Kp]
    unary_t = jnp.sum(unary * d, axis=2)                         # [Bt,T]
    unary_diff = jnp.sum(unary_t * w, axis=1)                    # [Bt] (pred - gold)

    # ---- Transition term -----------------------------------------------------
    # prev[t] = tag[t-1]; the wrapped-around t==0 slot gets a -1 sentinel so no
    # lane matches (replaces the full-rank t_iota mask of v1).
    t_row = lax.broadcasted_iota(jnp.int32, (1, 1, T), 2)        # [1,1,T]
    prev = pltpu.roll(tags.reshape(2 * Bt, T), shift=1, axis=1).reshape(2, Bt, T)
    prev = jnp.where(t_row == 0, jnp.int32(-1), prev)            # [2,Bt,T]

    # Row gather binary[tag[t-1], :] as an MXU matmul; one-hots are exact in
    # bf16, so only `binary`'s dtype affects accuracy.
    oh_prev = (k3[None] == prev[..., None]).astype(binary.dtype)  # [2,Bt,T,Kp]
    trans = jnp.dot(oh_prev.reshape(2 * Bt * T, Kp), binary,
                    preferred_element_type=jnp.float32).reshape(2, Bt, T, Kp)

    # Reduce over the tag lane immediately (gather at the current tag), apply
    # the sequence mask at [2,Bt,T], then reduce over time.
    trans_t = jnp.sum(jnp.where(k3[None] == tags[..., None], trans, 0.0), axis=3)  # [2,Bt,T]
    trans_scores = jnp.sum(trans_t * w[None], axis=2)                              # [2,Bt]

    # Hinge per sequence: relu(pred_score - gold_score).
    diff = unary_diff + trans_scores[1] - trans_scores[0]         # [Bt]
    loss_ref[...] = jnp.maximum(diff, 0.0)[:, None]               # [Bt,1]


def _tiling(B, T, Kp):
    """Generation-aware batch tile, padded batch, and scoped-VMEM limit."""
    # ~16 live f32 [T,Kp] planes per sequence row (double-buffered unary input,
    # one-hots, transition temporaries) — conservative.
    bytes_per_row = 16 * T * Kp * 4
    if _VMEM_CAP >= 96 * 1024 * 1024:        # v5e / v6e: 128 MiB physical VMEM
        temp_budget = 40 * 1024 * 1024
        vmem_limit = 64 * 1024 * 1024
    else:                                     # v7x: 64 MiB physical VMEM
        temp_budget = 16 * 1024 * 1024
        vmem_limit = 32 * 1024 * 1024

    bt_cap = max(8, min(2048, (temp_budget // bytes_per_row) // 8 * 8))
    if B >= 32:
        # Keep >= 4 grid steps (>= 2 per TensorCore on v7x) so the "parallel"
        # batch axis can be split across cores and DMA stays double-buffered.
        bt = min(bt_cap, max(8, (B // 4) // 8 * 8))
        bpad = ((B + bt - 1) // bt) * bt
    elif B <= bt_cap:
        bt, bpad = B, B
    else:
        bt = bt_cap
        bpad = ((B + bt - 1) // bt) * bt
    return bt, bpad, vmem_limit


@functools.partial(jax.jit, static_argnames=("mxu_dtype",))
def structured_perceptron_loss(unary, binary, tags, pred_tags, mask, *,
                               mxu_dtype=jnp.bfloat16):
    """loss = sum_b relu(score(pred_b) - score(gold_b)); gold+pred in one kernel pass."""
    B, T, K = unary.shape
    Kp = ((K + 127) // 128) * 128            # lane-dense / MXU-friendly tag axis
    Bt, Bpad, vmem_limit = _tiling(B, T, Kp)
    grid = Bpad // Bt

    unary_p = jnp.pad(unary.astype(jnp.float32),
                      ((0, Bpad - B), (0, 0), (0, Kp - K)))
    binary_p = jnp.pad(binary.astype(jnp.float32),
                       ((0, Kp - K), (0, Kp - K))).astype(mxu_dtype)
    tags2 = jnp.stack([tags.astype(jnp.int32), pred_tags.astype(jnp.int32)], axis=0)
    tags2 = jnp.pad(tags2, ((0, 0), (0, Bpad - B), (0, 0)))
    maskw = jnp.pad(mask.astype(jnp.float32), ((0, Bpad - B), (0, 0)))

    per_seq = pl.pallas_call(
        _sp_loss_kernel,
        out_shape=jax.ShapeDtypeStruct((Bpad, 1), jnp.float32),
        grid_spec=pltpu.PrefetchScalarGridSpec(
            num_scalar_prefetch=0,
            grid=(grid,),
            in_specs=[
                pl.BlockSpec((Bt, T, Kp), lambda i: (i, 0, 0)),   # unary (B-tiled)
                pl.BlockSpec((Kp, Kp), lambda i: (0, 0)),         # binary (resident)
                pl.BlockSpec((2, Bt, T), lambda i: (0, i, 0)),    # gold+pred tags
                pl.BlockSpec((Bt, T), lambda i: (i, 0)),          # mask weights
            ],
            out_specs=pl.BlockSpec((Bt, 1), lambda i: (i, 0)),    # per-seq losses
        ),
        compiler_params=pltpu.CompilerParams(
            dimension_semantics=("parallel",),   # batch tiles split across TCs
            vmem_limit_bytes=vmem_limit,
        ),
    )(unary_p, binary_p, tags2, maskw)

    # Padded batch rows have mask 0 -> zero loss, so a plain sum is exact.
    return jnp.sum(per_seq)


def pad_predicted_tags(predicted_tags, max_len):
    """Host-side pad_sequence equivalent — done ONCE per batch, outside the jit path."""
    pred = np.zeros((len(predicted_tags), max_len), dtype=np.int32)
    for i, p in enumerate(predicted_tags):
        pred[i, : len(p)] = np.asarray(p, dtype=np.int32)
    return jnp.asarray(pred)


def structured_perceptron_forward(unary, binary, tags, predicted_tags, mask):
    """Mirrors StructuredPerceptron.forward (predicted_tags: ragged list of lists)."""
    pred = pad_predicted_tags(predicted_tags, unary.shape[1])
    return structured_perceptron_loss(unary, binary, tags, pred, mask)


def _reference_forward(unary, binary, tags, predicted_tags, mask):
    """Pure numpy re-implementation of the PyTorch forward (for verification)."""
    unary = np.asarray(unary, dtype=np.float64)
    binary = np.asarray(binary, dtype=np.float64)
    tags = np.asarray(tags)
    mask = np.asarray(mask)
    B, T, K = unary.shape
    pred = np.zeros((B, T), dtype=np.int64)
    for i, p in enumerate(predicted_tags):
        pred[i, : len(p)] = p

    def score(tg):
        out = np.zeros(B)
        for b in range(B):
            s = 0.0
            L = int(mask[b].sum())
            for i in range(L):
                if i == 0:
                    s += unary[b, i, tg[b, i]]
                else:
                    s += unary[b, i, tg[b, i]] + binary[tg[b, i - 1], tg[b, i]]
            out[b] = s
        return out

    g = score(tags)
    p = score(pred)
    return float(np.sum(np.maximum(p - g, 0.0)))


def _make_case(key, B, T, K):
    k_u, k_b, k_g, k_p, k_l = jax.random.split(key, 5)
    unary = jax.random.normal(k_u, (B, T, K), dtype=jnp.float32)
    binary = 0.5 * jax.random.normal(k_b, (K, K), dtype=jnp.float32)
    gold = jax.random.randint(k_g, (B, T), 0, K, dtype=jnp.int32)
    lens = np.asarray(jax.random.randint(k_l, (B,), 1, T + 1, dtype=jnp.int32))
    mask = jnp.asarray([[1 if t < int(L) else 0 for t in range(T)] for L in lens],
                       dtype=jnp.int32)
    pred_np = np.asarray(jax.random.randint(k_p, (B, T), 0, K, dtype=jnp.int32))
    predicted = [pred_np[b, : int(lens[b])].tolist() for b in range(B)]
    return unary, binary, gold, predicted, mask


def _check_case(key, B, T, K):
    unary, binary, gold, predicted, mask = _make_case(key, B, T, K)
    pred_padded = pad_predicted_tags(predicted, T)
    ref = _reference_forward(unary, binary, gold, predicted, mask)

    # Exact path: f32 MXU operands, tight tolerance against the f64 reference.
    loss_f32 = jax.block_until_ready(
        structured_perceptron_loss(unary, binary, gold, pred_padded, mask,
                                   mxu_dtype=jnp.float32))
    assert np.allclose(float(loss_f32), ref, rtol=1e-4, atol=1e-4), (float(loss_f32), ref)

    # Fast path: bf16 MXU operands (one-hots exact; only binary is rounded).
    loss_bf16 = jax.block_until_ready(
        structured_perceptron_loss(unary, binary, gold, pred_padded, mask,
                                   mxu_dtype=jnp.bfloat16))
    assert np.allclose(float(loss_bf16), ref, rtol=2e-2, atol=5e-2), (float(loss_bf16), ref)


if __name__ == "__main__":
    key = jax.random.PRNGKey(0)
    k1, k2 = jax.random.split(key)

    # Small shape matching the module's typical use (batch=2, seq=8, tags=16).
    _check_case(k1, B=2, T=8, K=16)

    # Larger batch to exercise the multi-step ("parallel") grid + batch padding.
    _check_case(k2, B=37, T=8, K=16)

    # TODO(synk): get_tags / decode (Viterbi) are inference helpers, not part of
    # forward(); they are not implemented here.
    print("KERNEL_OK")
</pallas_src>

<mosaic_0001>
module attributes {stable_mosaic.version = 11 : i64} {
  func.func @_sp_loss_kernel(%arg0: i32, %arg1: memref<2x8x128xf32, #tpu.memory_space<vmem>>, %arg2: memref<128x128xf32, #tpu.memory_space<vmem>>, %arg3: memref<2x2x8xi32, #tpu.memory_space<vmem>>, %arg4: memref<2x8xf32, #tpu.memory_space<vmem>>, %arg5: memref<2x1xf32, #tpu.memory_space<vmem>>) attributes {dimension_semantics = [#tpu.dimension_semantics<parallel>], iteration_bounds = array<i64: 1>, scalar_prefetch = 0 : i64, scratch_operands = 0 : i64, tpu.core_type = #tpu.core_type<tc>, window_params = [{transform_indices = @transform_0, window_bounds = array<i64: 2, 8, 128>}, {pipeline_mode = #tpu.pipeline_mode<synchronous>, transform_indices = @transform_1, window_bounds = array<i64: 128, 128>}, {transform_indices = @transform_2, window_bounds = array<i64: 2, 2, 8>}, {transform_indices = @transform_3, window_bounds = array<i64: 2, 8>}, {transform_indices = @transform_4, window_bounds = array<i64: 2, 1>}]} {
    %c0 = arith.constant 0 : index
    %c0_0 = arith.constant 0 : index
    %c0_1 = arith.constant 0 : index
    %0 = vector.load %arg1[%c0, %c0_0, %c0_1] : memref<2x8x128xf32, #tpu.memory_space<vmem>>, vector<2x8x128xf32>
    %c0_2 = arith.constant 0 : index
    %c0_3 = arith.constant 0 : index
    %1 = vector.load %arg2[%c0_2, %c0_3] : memref<128x128xf32, #tpu.memory_space<vmem>>, vector<128x128xf32>
    %c0_4 = arith.constant 0 : index
    %c0_5 = arith.constant 0 : index
    %c0_6 = arith.constant 0 : index
    %2 = vector.load %arg3[%c0_4, %c0_5, %c0_6] : memref<2x2x8xi32, #tpu.memory_space<vmem>>, vector<2x2x8xi32>
    %c0_7 = arith.constant 0 : index
    %c0_8 = arith.constant 0 : index
    %3 = vector.load %arg4[%c0_7, %c0_8] : memref<2x8xf32, #tpu.memory_space<vmem>>, vector<2x8xf32>
    %4 = vector.extract_strided_slice %2 {offsets = [0, 0, 0], sizes = [1, 2, 8], strides = [1, 1, 1]} : vector<2x2x8xi32> to vector<1x2x8xi32>
    %5 = vector.shape_cast %4 : vector<1x2x8xi32> to vector<2x8xi32>
    %6 = vector.extract_strided_slice %2 {offsets = [1, 0, 0], sizes = [1, 2, 8], strides = [1, 1, 1]} : vector<2x2x8xi32> to vector<1x2x8xi32>
    %7 = vector.shape_cast %6 : vector<1x2x8xi32> to vector<2x8xi32>
    %8 = tpu.iota {dimensions = array<i32: 2>} : vector<1x1x128xi32>
    %9 = vector.shape_cast %7 : vector<2x8xi32> to vector<2x8x1xi32>
    %10 = vector.broadcast %8 : vector<1x1x128xi32> to vector<2x8x128xi32>
    %11 = vector.broadcast %9 : vector<2x8x1xi32> to vector<2x8x128xi32>
    %12 = arith.cmpi eq, %10, %11 : vector<2x8x128xi32>
    %13 = arith.extui %12 : vector<2x8x128xi1> to vector<2x8x128xi32>
    %14 = arith.sitofp %13 : vector<2x8x128xi32> to vector<2x8x128xf32>
    %15 = vector.shape_cast %5 : vector<2x8xi32> to vector<2x8x1xi32>
    %16 = vector.broadcast %8 : vector<1x1x128xi32> to vector<2x8x128xi32>
    %17 = vector.broadcast %15 : vector<2x8x1xi32> to vector<2x8x128xi32>
    %18 = arith.cmpi eq, %16, %17 : vector<2x8x128xi32>
    %19 = arith.extui %18 : vector<2x8x128xi1> to vector<2x8x128xi32>
    %20 = arith.sitofp %19 : vector<2x8x128xi32> to vector<2x8x128xf32>
    %21 = arith.subf %14, %20 : vector<2x8x128xf32>
    %22 = arith.mulf %0, %21 : vector<2x8x128xf32>
    %cst = arith.constant dense<0.000000e+00> : vector<2x8xf32>
    %23 = vector.multi_reduction <add>, %22, %cst [2] : vector<2x8x128xf32> to vector<2x8xf32>
    %24 = arith.mulf %23, %3 : vector<2x8xf32>
    %cst_9 = arith.constant dense<0.000000e+00> : vector<2xf32>
    %25 = vector.multi_reduction <add>, %24, %cst_9 [1] : vector<2x8xf32> to vector<2xf32>
    %26 = tpu.iota {dimensions = array<i32: 2>} : vector<1x1x8xi32>
    %27 = vector.shape_cast %2 : vector<2x2x8xi32> to vector<4x8xi32>
    %c1_i32 = arith.constant 1 : i32
    %28 = tpu.dynamic_rotate %27 by %c1_i32 dim 1 : vector<4x8xi32>, i32 -> vector<4x8xi32>
    %29 = vector.shape_cast %28 : vector<4x8xi32> to vector<2x2x8xi32>
    %c0_i32 = arith.constant 0 : i32
    %30 = vector.broadcast %c0_i32 : i32 to vector<1x1x8xi32>
    %31 = arith.cmpi eq, %26, %30 : vector<1x1x8xi32>
    %c-1_i32 = arith.constant -1 : i32
    %32 = vector.shape_cast %31 : vector<1x1x8xi1> to vector<1x1x8xi1>
    %33 = vector.broadcast %32 : vector<1x1x8xi1> to vector<2x2x8xi1>
    %34 = vector.broadcast %c-1_i32 : i32 to vector<2x2x8xi32>
    %35 = arith.select %33, %34, %29 : vector<2x2x8xi1>, vector<2x2x8xi32>
    %36 = vector.shape_cast %8 : vector<1x1x128xi32> to vector<1x1x1x128xi32>
    %37 = vector.shape_cast %35 : vector<2x2x8xi32> to vector<2x2x8x1xi32>
    %38 = vector.broadcast %36 : vector<1x1x1x128xi32> to vector<2x2x8x128xi32>
    %39 = vector.broadcast %37 : vector<2x2x8x1xi32> to vector<2x2x8x128xi32>
    %40 = arith.cmpi eq, %38, %39 : vector<2x2x8x128xi32>
    %41 = arith.extui %40 : vector<2x2x8x128xi1> to vector<2x2x8x128xi32>
    %42 = arith.sitofp %41 : vector<2x2x8x128xi32> to vector<2x2x8x128xf32>
    %43 = vector.shape_cast %42 : vector<2x2x8x128xf32> to vector<32x128xf32>
    %cst_10 = arith.constant dense<0.000000e+00> : vector<32x128xf32>
    %44 = tpu.matmul %43, %1, %cst_10 {dimension_numbers = #tpu.dot_dimension_numbers<[1], [0], [0], [1], [0, 0, 1, 1], [], []>} : vector<32x128xf32>, vector<128x128xf32>, vector<32x128xf32> -> vector<32x128xf32>
    %45 = vector.shape_cast %44 : vector<32x128xf32> to vector<2x2x8x128xf32>
    %46 = vector.shape_cast %8 : vector<1x1x128xi32> to vector<1x1x1x128xi32>
    %47 = vector.shape_cast %2 : vector<2x2x8xi32> to vector<2x2x8x1xi32>
    %48 = vector.broadcast %46 : vector<1x1x1x128xi32> to vector<2x2x8x128xi32>
    %49 = vector.broadcast %47 : vector<2x2x8x1xi32> to vector<2x2x8x128xi32>
    %50 = arith.cmpi eq, %48, %49 : vector<2x2x8x128xi32>
    %cst_11 = arith.constant 0.000000e+00 : f32
    %51 = vector.broadcast %cst_11 : f32 to vector<2x2x8x128xf32>
    %52 = arith.select %50, %45, %51 : vector<2x2x8x128xi1>, vector<2x2x8x128xf32>
    %cst_12 = arith.constant dense<0.000000e+00> : vector<2x2x8xf32>
    %53 = vector.multi_reduction <add>, %52, %cst_12 [3] : vector<2x2x8x128xf32> to vector<2x2x8xf32>
    %54 = vector.shape_cast %3 : vector<2x8xf32> to vector<1x2x8xf32>
    %55 = vector.broadcast %54 : vector<1x2x8xf32> to vector<2x2x8xf32>
    %56 = arith.mulf %53, %55 : vector<2x2x8xf32>
    %cst_13 = arith.constant dense<0.000000e+00> : vector<2x2xf32>
    %57 = vector.multi_reduction <add>, %56, %cst_13 [2] : vector<2x2x8xf32> to vector<2x2xf32>
    %58 = vector.extract_strided_slice %57 {offsets = [1, 0], sizes = [1, 2], strides = [1, 1]} : vector<2x2xf32> to vector<1x2xf32>
    %59 = vector.shape_cast %58 : vector<1x2xf32> to vector<2xf32>
    %60 = arith.addf %25, %59 : vector<2xf32>
    %61 = vector.extract_strided_slice %57 {offsets = [0, 0], sizes = [1, 2], strides = [1, 1]} : vector<2x2xf32> to vector<1x2xf32>
    %62 = vector.shape_cast %61 : vector<1x2xf32> to vector<2xf32>
    %63 = arith.subf %60, %62 : vector<2xf32>
    %cst_14 = arith.constant 0.000000e+00 : f32
    %64 = vector.broadcast %cst_14 : f32 to vector<2xf32>
    %65 = arith.maximumf %63, %64 : vector<2xf32>
    %66 = vector.shape_cast %65 : vector<2xf32> to vector<2x1xf32>
    %c0_15 = arith.constant 0 : index
    %c0_16 = arith.constant 0 : index
    %67 = vector.load %arg5[%c0_15, %c0_16] : memref<2x1xf32, #tpu.memory_space<vmem>>, vector<2x1xf32>
    tpu.vector_store %arg5[%c0_15, %c0_16], %66 {strides = array<i32>} : memref<2x1xf32, #tpu.memory_space<vmem>>, vector<2x1xf32>,
    return
  }
  func.func @transform_0(%arg0: i32) -> (i32, i32, i32) {
    %c0_i32 = arith.constant 0 : i32
    %c0_i32_0 = arith.constant 0 : i32
    %c0_i32_1 = arith.constant 0 : i32
    return %arg0, %c0_i32, %c0_i32_0 : i32, i32, i32
  }
  func.func @transform_1(%arg0: i32) -> (i32, i32) {
    %c0_i32 = arith.constant 0 : i32
    %c0_i32_0 = arith.constant 0 : i32
    %c0_i32_1 = arith.constant 0 : i32
    return %c0_i32, %c0_i32_0 : i32, i32
  }
  func.func @transform_2(%arg0: i32) -> (i32, i32, i32) {
    %c0_i32 = arith.constant 0 : i32
    %c0_i32_0 = arith.constant 0 : i32
    %c0_i32_1 = arith.constant 0 : i32
    return %c0_i32, %arg0, %c0_i32_0 : i32, i32, i32
  }
  func.func @transform_3(%arg0: i32) -> (i32, i32) {
    %c0_i32 = arith.constant 0 : i32
    %c0_i32_0 = arith.constant 0 : i32
    return %arg0, %c0_i32 : i32, i32
  }
  func.func @transform_4(%arg0: i32) -> (i32, i32) {
    %c0_i32 = arith.constant 0 : i32
    %c0_i32_0 = arith.constant 0 : i32
    return %arg0, %c0_i32 : i32, i32
  }
}

</mosaic_0001>

<bundles_post_ra>
// kernel: structured_perceptron_loss.1
= control target key start
LH: loop header
LB: loop body
LE: loop exit
PB: predicated region body
PF: predicated region fallthrough
CT: control target
= control target key end

     0   :  { %v38_v0 = vlaneseq  ;;  %v494_v3 = vmov 1983009808   ;;  %s495_s19 = smov 8   ;;  %vm138_vm0 = vcmask 1047616   ;;  %s496_s5 = smov 121   ;;  %v497_v59 = vmov 1.0   ;;  %s650_s2 = inlined_call_operand.vmem [shape: s32[2,2,8], index: 2, kind: input, shape index: {}]   ;;  %s651_s1 = inlined_call_operand.vmem [shape: f32[128,128], index: 1, kind: input, shape index: {}]   ;;  %s652_s0 = inlined_call_operand.vmem [shape: f32[2,8,128], index: 0, kind: input, shape index: {}]   ;;  %s653_s3 = inlined_call_operand.vmem [shape: f32[2,8], index: 3, kind: input, shape index: {}]   ;;  %s654_s4 = inlined_call_operand.vmem [shape: f32[2,1], index: 4, kind: output, shape index: {}]  }
   0x1   :  { %v528_v1 = vld [vmem:[%s650_s2] sm:$0x3]  ;;  %v533_v2 = vld [vmem:[%s650_s2 + $0x2] sm:$0x3]  ;;  %v132_v4 = vunpack.c.l.s4 %v494_v3  ;;  %v20_v16 = vld [vmem:[%s651_s1 + $0x8] sm:$0xff]  ;;  %v498_v63 = vmov 0.0  }
   0x2   :  { %v536_v5 = vshrl.u32 %v38_v0, 7  ;;  %v130_v6 = vcombine.low %v528_v1, %v533_v2  ;;  %v19_v15 = vld [vmem:[%s651_s1] sm:$0xff]  ;;  %v21_v17 = vld [vmem:[%s651_s1 + $0x10] sm:$0xff]  ;;  %v22_v20 = vld [vmem:[%s651_s1 + $0x18] sm:$0xff]  ;;  %v590_v42 = vand.u32 127, %v38_v0  ;;  %vm123_vm10 = vcmask 1041409  }
   0x3   :  { %v133_v7 = vunpack.c.0.s8 %v132_v4  ;;  %v438_v19 = vpack.c.bf16 %v20_v16, %v19_v15  ;;  %v442_v21 = vpack.c.bf16 %v22_v20, %v21_v17  ;;  %v23_v22 = vld [vmem:[%s651_s1 + $0x20] sm:$0xff]  ;;  %v24_v23 = vld [vmem:[%s651_s1 + $0x28] sm:$0xff]  ;;  %v25_v26 = vld [vmem:[%s651_s1 + $0x30] sm:$0xff]  ;;  %vm126_vm11 = vcmask 58368  }
   0x4   :  { %v446_v25 = vpack.c.bf16 %v24_v23, %v23_v22  ;;  %v26_v27 = vld [vmem:[%s651_s1 + $0x38] sm:$0xff]  ;;  %v27_v30 = vld [vmem:[%s651_s1 + $0x40] sm:$0xff]  ;;  %v28_v31 = vld [vmem:[%s651_s1 + $0x48] sm:$0xff]  ;;  %vm153_vm1 = vcmp.eq.s32.totalorder %v590_v42, 0  ;;  %v594_v43 = vsub.s32 1, %v536_v5  ;;  %v597_v44 = vsub.s32 0, %v536_v5 }
   0x5   :  { %v136_v8 = vsub.s32 %v133_v7, %v536_v5  ;;  %470 = vmatprep.subr.bf16.mxu1 %v438_v19  ;;  %439 = vmatprep.subr.bf16.mxu0 %v438_v19  ;;  %v450_v29 = vpack.c.bf16 %v26_v27, %v25_v26  ;;  %v454_v32 = vpack.c.bf16 %v28_v31, %v27_v30  ;;  %v29_v33 = vld [vmem:[%s651_s1 + $0x50] sm:$0xff]  ;;  %v30_v34 = vld [vmem:[%s651_s1 + $0x58] sm:$0xff]  ;;  %v31_v36 = vld [vmem:[%s651_s1 + $0x60] sm:$0xff]  ;;  %vm362_vm12 = vcmask 1024  }
   0x6   :  { %478 = vmatpush3.bf16.msra.mxu1 %v438_v19  ;;  %441 = vmatpush3.bf16.msra.mxu0 %v438_v19  ;;  %v458_v35 = vpack.c.bf16 %v30_v34, %v29_v33  ;;  %v32_v37 = vld [vmem:[%s651_s1 + $0x68] sm:$0xff]  ;;  %v33_v39 = vld [vmem:[%s651_s1 + $0x70] sm:$0xff]  ;;  %v34_v40 = vld [vmem:[%s651_s1 + $0x78] sm:$0xff]  ;;  %v43_v53 = vrot.slane %v533_v2, %v597_v44  ;;  %v50_v54 = vrot.slane %v533_v2, %v594_v43 }
   0x7   :  { %v137_v9 = vrot.slane %v130_v6, %v136_v8  ;;  %471 = vmatprep.subr.bf16.mxu1 %v442_v21  ;;  %443 = vmatprep.subr.bf16.mxu0 %v442_v21  ;;  %v462_v38 = vpack.c.bf16 %v32_v37, %v31_v36  ;;  %v466_v41 = vpack.c.bf16 %v34_v40, %v33_v39  ;;  %v17_v3 = vld [vmem:[%s652_s0] sm:$0xff] }
   0x8   :  { %v63_v55 = vrot.slane %v528_v1, %v597_v44  ;;  %v70_v56 = vrot.slane %v528_v1, %v594_v43  ;;  %v37_v22 = vld [vmem:[%s653_s3] sm:$0x3] }
   0x9   :  { %139 = vrot.lane.b32.xlu0 %v137_v9, %s495_s19  ;;  %v92_v23 = vrot.slane %v37_v22, %v597_v44 }
   0xa   :  { %479 = vmatpush3.bf16.msra.mxu1 %v442_v21  ;;  %445 = vmatpush3.bf16.msra.mxu0 %v442_v21 }
   0xb   :  { %472 = vmatprep.subr.bf16.mxu1 %v446_v25  ;;  %447 = vmatprep.subr.bf16.mxu0 %v446_v25 }
   0xe   :  { %480 = vmatpush3.bf16.msra.mxu1 %v446_v25  ;;  %449 = vmatpush3.bf16.msra.mxu0 %v446_v25  ;;  %v99_v25 = vrot.slane %v37_v22, %v594_v43 }
   0xf   :  { %473 = vmatprep.subr.bf16.mxu1 %v450_v29  ;;  %451 = vmatprep.subr.bf16.mxu0 %v450_v29 }
  0x12   :  { %481 = vmatpush3.bf16.msra.mxu1 %v450_v29  ;;  %453 = vmatpush3.bf16.msra.mxu0 %v450_v29 }
  0x13   :  { %474 = vmatprep.subr.bf16.mxu1 %v454_v32  ;;  %455 = vmatprep.subr.bf16.mxu0 %v454_v32 }
  0x16   :  { %482 = vmatpush3.bf16.msra.mxu1 %v454_v32  ;;  %457 = vmatpush3.bf16.msra.mxu0 %v454_v32 }
  0x17   :  { %475 = vmatprep.subr.bf16.mxu1 %v458_v35  ;;  %459 = vmatprep.subr.bf16.mxu0 %v458_v35 }
  0x1a   :  { %483 = vmatpush3.bf16.msra.mxu1 %v458_v35  ;;  %461 = vmatpush3.bf16.msra.mxu0 %v458_v35 }
  0x1b   :  { %476 = vmatprep.subr.bf16.mxu1 %v462_v38  ;;  %463 = vmatprep.subr.bf16.mxu0 %v462_v38 }
  0x1e   :  { %484 = vmatpush3.bf16.msra.mxu1 %v462_v38  ;;  %465 = vmatpush3.bf16.msra.mxu0 %v462_v38 }
  0x1f   :  { %477 = vmatprep.subr.bf16.mxu1 %v466_v41  ;;  %467 = vmatprep.subr.bf16.mxu0 %v466_v41 }
  0x22   :  { %485 = vmatpush3.bf16.msra.mxu1 %v466_v41  ;;  %469 = vmatpush3.bf16.msra.mxu0 %v466_v41  ;;  %v117_v41 = vsub.s32 %v590_v42, %v536_v5 }
  0x7b   :  { %v140_v10 = vpop.permute.xlu0 %139 }
  0x7c   :  { %v141_v11 = vsel %vm138_vm0, %v140_v10, %v137_v9 }
  0x7d   :  { %142 = vrot.lane.b32.xlu0 %v141_v11, %s495_s19 }
  0xef   :  { %v143_v12 = vpop.permute.xlu0 %142 }
  0xf0   :  { %v144_v13 = vsel %vm138_vm0, %v143_v12, %v137_v9  ;;  %v18_v12 = vld [vmem:[%s652_s0 + $0x8] sm:$0xff] }
  0xf1   :  { %v151_v14 = vrot.slane %v144_v13, %v136_v8 }
  0xf3   :  { %v152_v18 = vcombine.high %v151_v14, %v151_v14  ;;  %v162_v28 = vrot.slane %v151_v14, %v136_v8 }
  0xf5   :  { %v169_v24 = vrot.slane %v152_v18, %v136_v8 }
  0xf7   :  { %172 = vrot.lane.b32.xlu1 %v169_v24, %s496_s5  ;;  %v499_v24 = vmov 0  }
  0xf8   :  { %492 = vset.pattern.permute.xlu1 %v499_v24  ;;  %493 = vset.pattern.permute.xlu0 %v499_v24 }
  0xfb   :  { %170 = vrot.lane.b32.xlu1 %v162_v28, %s496_s5 }
 0x169   :  { %v173_v45 = vpop.permute.xlu1 %172 }
 0x16a   :  { %v175_v46 = vsel %vm153_vm1, 4294967295, %v173_v45 }
 0x16b   :  { %v200_v47 = vrot.slane %v175_v46, %v594_v43  ;;  %v193_v48 = vrot.slane %v175_v46, %v597_v44 }
 0x16d   :  { %202 = vbcast.lane.b32.xlu1 %v200_v47, 256  ;;  %195 = vbcast.lane.b32.xlu0 %v193_v48, 256  ;;  %v171_v49 = vpop.permute.xlu1 %170 }
 0x16e   :  { %v174_v50 = vsel %vm153_vm1, 4294967295, %v171_v49 }
 0x16f   :  { %v186_v51 = vrot.slane %v174_v50, %v594_v43  ;;  %v179_v52 = vrot.slane %v174_v50, %v597_v44 }
 0x171   :  { %188 = vbcast.lane.b32.xlu1 %v186_v51, 256  ;;  %181 = vbcast.lane.b32.xlu0 %v179_v52, 256 }
 0x175   :  { %45 = vbcast.lane.b32.xlu0 %v43_v53, 256  ;;  %52 = vbcast.lane.b32.xlu1 %v50_v54, 256 }
 0x179   :  { %65 = vbcast.lane.b32.xlu0 %v63_v55, 256  ;;  %72 = vbcast.lane.b32.xlu1 %v70_v56, 256 }
 0x1df   :  { %v196_v57 = vpop.permute.xlu0 %195  ;;  %v203_v58 = vpop.permute.xlu1 %202 }
 0x1e0   :  { %vm207_vm2 = vcmp.eq.s32.totalorder %v590_v42, %v203_v58  ;;  %vm206_vm3 = vcmp.eq.s32.totalorder %v590_v42, %v196_v57 }
 0x1e1   :  { %435 = vmatprep.mubr.msk.f32.mxu1 %vm206_vm3, %v497_v59 }
 0x1e2   :  { %436 = vmatmul.mubr.msk.f32.vlgmr.msra.gmra.mrb[0].mxu1 %vm207_vm2, %v497_v59 }
 0x1e3   :  { %v182_v60 = vpop.permute.xlu0 %181  ;;  %v189_v61 = vpop.permute.xlu1 %188 }
 0x1e4   :  { %vm205_vm4 = vcmp.eq.s32.totalorder %v590_v42, %v189_v61  ;;  %vm204_vm5 = vcmp.eq.s32.totalorder %v590_v42, %v182_v60 }
 0x1e5   :  { %432 = vmatprep.mubr.msk.f32.mxu0 %vm204_vm5, %v497_v59 }
 0x1e6   :  { %433 = vmatmul.mubr.msk.f32.vlgmr.msra.gmra.mrb[0].mxu0 %vm205_vm4, %v497_v59 }
 0x1e7   :  { %v46_v62 = vpop.permute.xlu0 %45  ;;  %v53_v7 = vpop.permute.xlu1 %52 }
 0x1e8   :  { %vm54_vm6 = vcmp.eq.s32.totalorder %v590_v42, %v46_v62  ;;  %vm55_vm8 = vcmp.eq.s32.totalorder %v590_v42, %v53_v7 }
 0x1e9   :  { %v368_v0 = vsel %vm54_vm6, 1.0, %v498_v63  ;;  %v369_v9 = vsel %vm55_vm8, 1.0, %v498_v63 }
 0x1eb   :  { %v66_v1 = vpop.permute.xlu0 %65  ;;  %v73_v8 = vpop.permute.xlu1 %72 }
 0x1ec   :  { %vm74_vm7 = vcmp.eq.s32.totalorder %v590_v42, %v66_v1  ;;  %vm75_vm9 = vcmp.eq.s32.totalorder %v590_v42, %v73_v8 }
 0x1ed   :  { %v370_v2 = vsel %vm74_vm7, 1.0, %v498_v63  ;;  %v371_v10 = vsel %vm75_vm9, 1.0, %v498_v63 }
 0x1ee   :  { %v80_v4 = vsub.f32 %v368_v0, %v370_v2  ;;  %v81_v11 = vsub.f32 %v369_v9, %v371_v10 }
 0x1f0   :  { %v82_v6 = vmul.f32 %v80_v4, %v17_v3  ;;  %v83_v13 = vmul.f32 %v81_v11, %v18_v12 }
 0x1f2   :  { %84 = vadd.xlane.f32.xlu0 %v82_v6  ;;  %86 = vadd.xlane.f32.xlu1 %v83_v13 }
 0x27f   :  { %v87_v26 = vpop.xlane.xlu1 %86  ;;  %v85_v27 = vpop.xlane.xlu0 %84 }
 0x2b5   :  { %v437_v14 = vpop.f32.mrb[0].mxu1 }
 0x2b6   :  { %v292_v15 = vpop.f32.mrb[1].mxu1  ;;  %v304_v20 = vsel %vm55_vm8, %v437_v14, 0.0 }
 0x2b7   :  { %v303_v21 = vsel %vm54_vm6, %v292_v15, 0.0 }
 0x2b9   :  { %v434_v16 = vpop.f32.mrb[0].mxu0 }
 0x2ba   :  { %v282_v17 = vpop.f32.mrb[1].mxu0  ;;  %v302_v18 = vsel %vm75_vm9, %v434_v16, 0.0 }
 0x2bb   :  { %307 = vadd.xlane.f32.xlu0 %v302_v18  ;;  %v301_v19 = vsel %vm74_vm7, %v282_v17, 0.0 }
 0x2bc   :  { %305 = vadd.xlane.f32.xlu1 %v301_v19 }
 0x2bf   :  { %311 = vadd.xlane.f32.xlu0 %v304_v20 }
 0x2c3   :  { %309 = vadd.xlane.f32.xlu0 %v303_v21 }
 0x2cd   :  { %94 = vbcast.lane.b32.xlu1 %v92_v23, 256 }
 0x2d9   :  { %101 = vbcast.lane.b32.xlu0 %v99_v25, 256 }
 0x348   :  { %v308_v28 = vpop.xlane.xlu0 %307 }
 0x349   :  { %v306_v29 = vpop.xlane.xlu1 %305 }
 0x34c   :  { %v312_v30 = vpop.xlane.xlu0 %311 }
 0x34d   :  { %v95_v31 = vpop.permute.xlu1 %94 }
 0x34e   :  { %v105_v32 = vmul.f32 %v95_v31, %v85_v27  ;;  %v313_v39 = vmul.f32 %v306_v29, %v95_v31 }
 0x350   :  { %110 = vperm.xlu1 %492, %v105_v32   ;;  %v310_v33 = vpop.xlane.xlu0 %309 }
 0x351   :  { %v315_v34 = vmul.f32 %v310_v33, %v95_v31 }
 0x353   :  { %328 = vperm.xlu0 %493, %v315_v34  }
 0x354   :  { %v102_v35 = vpop.permute.xlu0 %101 }
 0x355   :  { %v106_v36 = vmul.f32 %v102_v35, %v87_v26  ;;  %v314_v37 = vmul.f32 %v308_v28, %v102_v35  ;;  %v316_v38 = vmul.f32 %v312_v30, %v102_v35 }
 0x357   :  { %113 = vperm.xlu1 %492, %v106_v36   ;;  %325 = vperm.xlu0 %493, %v314_v37  }
 0x35b   :  { %331 = vperm.xlu1 %492, %v316_v38  }
 0x35f   :  { %322 = vperm.xlu1 %492, %v313_v39  }
 0x3cf   :  { %v111_v40 = vpop.permute.xlu1 %110 }
 0x3d0   :  { %v118_v45 = vrot.slane %v111_v40, %v117_v41 }
 0x3d2   :  { %v329_v43 = vpop.permute.xlu0 %328 }
 0x3d3   :  { %v344_v50 = vrot.slane %v329_v43, %v117_v41 }
 0x3d6   :  { %v114_v44 = vpop.permute.xlu1 %113  ;;  %v326_v52 = vpop.permute.xlu0 %325 }
 0x3d7   :  { %v122_v46 = vrot.slane %v114_v44, %v117_v41  ;;  %v340_v56 = vrot.slane %v326_v52, %v117_v41 }
 0x3d9   :  { %v124_v47 = vsel %vm123_vm10, %v122_v46, %v118_v45 }
 0x3da   :  { %v332_v48 = vpop.permute.xlu1 %331  ;;  %v127_v49 = vsel %vm126_vm11, %v124_v47, 0.0 }
 0x3db   :  { %v348_v51 = vrot.slane %v332_v48, %v117_v41  ;;  %128 = vadd.xlane.f32.xlu1 %v127_v49 }
 0x3dd   :  { %v350_v53 = vsel %vm123_vm10, %v348_v51, %v344_v50 }
 0x3de   :  { %v323_v54 = vpop.permute.xlu1 %322  ;;  %v356_v55 = vsel %vm126_vm11, %v350_v53, 0.0 }
 0x3df   :  { %v336_v5 = vrot.slane %v323_v54, %v117_v41  ;;  %357 = vadd.xlane.f32.xlu0 %v356_v55 }
 0x3e1   :  { %v349_v42 = vsel %vm123_vm10, %v340_v56, %v336_v5 }
 0x3e2   :  { %v353_v57 = vsel %vm126_vm11, %v349_v42, 0.0 }
 0x3e3   :  { %354 = vadd.xlane.f32.xlu0 %v353_v57 }
 0x468   :  { %v129_v59 = vpop.xlane.xlu1 %128 }
 0x46c   :  { %v358_v58 = vpop.xlane.xlu0 %357 }
 0x46d   :  { %v359_v60 = vadd.f32 %v358_v58, %v129_v59 }
 0x470   :  { %v355_v61 = vpop.xlane.xlu0 %354 }
 0x471   :  { %v360_v62 = vsub.f32 %v359_v60, %v355_v61 }
 0x473   :  { %v361_v63 = vmax.f32 %v360_v62, 0.0 }
 0x475   :  { %363 = vst.msk [vmem:[%s654_s4] sm:$0x3] %vm362_vm12, %v361_v63 }

</bundles_post_ra>
